<compile_context>
chip_gen: v7x
topology: tpu7x:2x2x1
jax: 0.10.0
libtpu: 0.0.40
codegen_flags: <defaults>
</compile_context>

<pallas_src>
import jax
import jax.numpy as jnp
from jax import lax
from jax.experimental import pallas as pl
from jax.experimental.pallas import tpu as pltpu

OBS_DIM = 16
ACT_DIM = 4
PAD_IN = 32                 # first-layer K, padded up from OBS_DIM+ACT_DIM=20
HIDDEN = 128
N_HIDDEN_LAYERS = 8         # Linear(128,128)+ReLU blocks after the first layer
BATCH = 8
HORIZON = 4                 # rollout horizon for the fused MVE kernel


def _mlp(x, a, w_in_ref, w_stack_ref, b_ref):
    """One forward pass of the network on in-kernel values.

    x: (B, OBS_DIM) f32, a: (B, ACT_DIM) f32 -> (B, HIDDEN) f32; the real
    delta is the first OBS_DIM lanes (output weight/bias are lane-padded)."""
    B = x.shape[0]
    # Fused concat + zero pad to K=32; a single first-layer matmul on the MXU.
    pad = jnp.zeros((B, PAD_IN - OBS_DIM - ACT_DIM), jnp.float32)
    xa = jnp.concatenate([x, a, pad], axis=-1).astype(jnp.bfloat16)
    h = jnp.dot(xa, w_in_ref[...], preferred_element_type=jnp.float32)
    h = jnp.maximum(h + b_ref[0:1, :], 0.0)        # f32 bias + ReLU (VPU, v5e-safe)

    # 8 hidden layers: (B,128) @ (128,128) + b, ReLU.  bf16 at the MXU,
    # f32 accumulation and f32 VPU epilogue.
    for i in range(N_HIDDEN_LAYERS):
        z = jnp.dot(h.astype(jnp.bfloat16), w_stack_ref[i],
                    preferred_element_type=jnp.float32)
        h = jnp.maximum(z + b_ref[i + 1:i + 2, :], 0.0)

    # Output layer (weight padded to 128 output lanes; no activation).
    o = jnp.dot(h.astype(jnp.bfloat16), w_stack_ref[N_HIDDEN_LAYERS],
                preferred_element_type=jnp.float32)
    return o + b_ref[N_HIDDEN_LAYERS + 1:N_HIDDEN_LAYERS + 2, :]


def mlp_kernel(x_ref, a_ref, w_in_ref, w_stack_ref, b_ref, out_ref):
    o = _mlp(x_ref[...], a_ref[...], w_in_ref, w_stack_ref, b_ref)
    out_ref[...] = o[:, :OBS_DIM].astype(out_ref.dtype)


def rollout_kernel(x0_ref, act_ref, w_in_ref, w_stack_ref, b_ref, out_ref):
    """H dynamics steps in one call: x_{t+1} = x_t + delta_t; stores every delta."""
    horizon = act_ref.shape[0]

    def step(t, x):
        o = _mlp(x, act_ref[t], w_in_ref, w_stack_ref, b_ref)
        delta = o[:, :OBS_DIM]
        out_ref[t] = delta.astype(out_ref.dtype)
        return x + delta

    lax.fori_loop(0, horizon, step, x0_ref[...])


def _vmem():
    return pl.BlockSpec(memory_space=pltpu.MemorySpace.VMEM)


def model_forward(x, a, params):
    """Single-step forward: x (B,OBS_DIM) f32, a (B,ACT_DIM) f32 -> (B,OBS_DIM) f32."""
    w_in, w_stack, b_all = params
    B = x.shape[0]
    return pl.pallas_call(
        mlp_kernel,
        out_shape=jax.ShapeDtypeStruct((B, OBS_DIM), jnp.float32),
        in_specs=[_vmem() for _ in range(5)],
        out_specs=_vmem(),
    )(x, a, w_in, w_stack, b_all)


def model_rollout(x0, actions, params):
    """Fused MVE rollout: x0 (B,OBS_DIM), actions (H,B,ACT_DIM) -> deltas (H,B,OBS_DIM).

    One pallas_call for the whole horizon: weights loaded into VMEM once,
    activations never round-trip through HBM between steps."""
    w_in, w_stack, b_all = params
    H, B, _ = actions.shape
    return pl.pallas_call(
        rollout_kernel,
        out_shape=jax.ShapeDtypeStruct((H, B, OBS_DIM), jnp.float32),
        in_specs=[_vmem() for _ in range(5)],
        out_specs=_vmem(),
    )(x0, actions, w_in, w_stack, b_all)


def init_params(key):
    """Deterministic init mimicking PyTorch's default Linear init
    (uniform in +/- 1/sqrt(fan_in)), packed for the kernel:
      w_in    (PAD_IN, HIDDEN)              bf16  (rows >= obs+act are zero)
      w_stack (N_HIDDEN_LAYERS+1, 128, 128) bf16  (last = wo, cols >= OBS_DIM zero)
      b_all   (N_HIDDEN_LAYERS+2, 128)      f32   (last row = bo, lane-padded)
    """
    in_dim = OBS_DIM + ACT_DIM
    ks = jax.random.split(key, 6)

    def unif(k, shape, fan_in):
        bound = 1.0 / jnp.sqrt(jnp.float32(fan_in))
        return jax.random.uniform(k, shape, jnp.float32, -bound, bound)

    w0 = unif(ks[0], (in_dim, HIDDEN), in_dim)
    b0 = unif(ks[1], (HIDDEN,), in_dim)
    wh = unif(ks[2], (N_HIDDEN_LAYERS, HIDDEN, HIDDEN), HIDDEN)
    bh = unif(ks[3], (N_HIDDEN_LAYERS, HIDDEN), HIDDEN)
    wo = unif(ks[4], (HIDDEN, OBS_DIM), HIDDEN)
    bo = unif(ks[5], (OBS_DIM,), HIDDEN)

    w_in = jnp.zeros((PAD_IN, HIDDEN), jnp.float32).at[:in_dim].set(w0)
    wo_pad = jnp.zeros((HIDDEN, HIDDEN), jnp.float32).at[:, :OBS_DIM].set(wo)
    w_stack = jnp.concatenate([wh, wo_pad[None]], axis=0)
    bo_pad = jnp.zeros((HIDDEN,), jnp.float32).at[:OBS_DIM].set(bo)
    b_all = jnp.concatenate([b0[None], bh, bo_pad[None]], axis=0)

    return (w_in.astype(jnp.bfloat16), w_stack.astype(jnp.bfloat16), b_all)


def reference_forward(x, a, params):
    """Pure-JAX f32 reference on the packed params (weights upcast back to f32)."""
    w_in, w_stack, b_all = params
    w_in = w_in.astype(jnp.float32)
    w_stack = w_stack.astype(jnp.float32)
    in_dim = OBS_DIM + ACT_DIM
    h = jnp.concatenate([x, a], axis=-1)
    h = jnp.maximum(h @ w_in[:in_dim] + b_all[0], 0.0)
    for i in range(N_HIDDEN_LAYERS):
        h = jnp.maximum(h @ w_stack[i] + b_all[i + 1], 0.0)
    o = h @ w_stack[N_HIDDEN_LAYERS] + b_all[N_HIDDEN_LAYERS + 1]
    return o[:, :OBS_DIM]


def reference_rollout(x0, actions, params):
    deltas = []
    x = x0
    for t in range(actions.shape[0]):
        d = reference_forward(x, actions[t], params)
        deltas.append(d)
        x = x + d
    return jnp.stack(deltas, axis=0)


if __name__ == "__main__":
    key = jax.random.PRNGKey(0)
    kx, ka, kr, kp = jax.random.split(key, 4)

    x = jax.random.normal(kx, (BATCH, OBS_DIM), jnp.float32)
    a = jax.random.normal(ka, (BATCH, ACT_DIM), jnp.float32)
    actions = jax.random.normal(kr, (HORIZON, BATCH, ACT_DIM), jnp.float32)
    params = init_params(kp)

    # Single-step forward (matches Model.forward semantics).
    out = jax.block_until_ready(model_forward(x, a, params))
    ref = reference_forward(x, a, params)
    assert out.shape == (BATCH, OBS_DIM)
    # bf16 activation casts over a 10-layer chain -> loosened tolerance.
    assert jnp.allclose(out, ref, atol=5e-2, rtol=5e-2), "single-step mismatch"

    # Fused H-step MVE rollout (one pallas_call; weights DMA'd once).
    roll = jax.block_until_ready(model_rollout(x, actions, params))
    roll_ref = reference_rollout(x, actions, params)
    assert roll.shape == (HORIZON, BATCH, OBS_DIM)
    assert jnp.allclose(roll, roll_ref, atol=1e-1, rtol=1e-1), "rollout mismatch"

    print("KERNEL_OK")
</pallas_src>

<mosaic_0001>
module attributes {stable_mosaic.version = 11 : i64} {
  func.func @mlp_kernel(%arg0: memref<8x16xf32, #tpu.memory_space<vmem>>, %arg1: memref<8x4xf32, #tpu.memory_space<vmem>>, %arg2: memref<32x128xbf16, #tpu.memory_space<vmem>>, %arg3: memref<9x128x128xbf16, #tpu.memory_space<vmem>>, %arg4: memref<10x128xf32, #tpu.memory_space<vmem>>, %arg5: memref<8x16xf32, #tpu.memory_space<vmem>>) attributes {dimension_semantics = [], scalar_prefetch = 0 : i64, scratch_operands = 0 : i64, tpu.core_type = #tpu.core_type<tc>} {
    %c0 = arith.constant 0 : index
    %c0_0 = arith.constant 0 : index
    %0 = vector.load %arg0[%c0, %c0_0] : memref<8x16xf32, #tpu.memory_space<vmem>>, vector<8x16xf32>
    %c0_1 = arith.constant 0 : index
    %c0_2 = arith.constant 0 : index
    %1 = vector.load %arg1[%c0_1, %c0_2] : memref<8x4xf32, #tpu.memory_space<vmem>>, vector<8x4xf32>
    %cst = arith.constant 0.000000e+00 : f32
    %2 = vector.broadcast %cst : f32 to vector<8x12xf32>
    %3 = tpu.concatenate %0, %1, %2 in 1 : vector<8x16xf32>, vector<8x4xf32>, vector<8x12xf32> -> vector<8x32xf32>
    %4 = arith.truncf %3 : vector<8x32xf32> to vector<8x32xbf16>
    %c0_3 = arith.constant 0 : index
    %c0_4 = arith.constant 0 : index
    %5 = vector.load %arg2[%c0_3, %c0_4] : memref<32x128xbf16, #tpu.memory_space<vmem>>, vector<32x128xbf16>
    %cst_5 = arith.constant dense<0.000000e+00> : vector<8x128xf32>
    %6 = tpu.matmul %4, %5, %cst_5 {dimension_numbers = #tpu.dot_dimension_numbers<[1], [0], [0], [1], [0, 0, 1, 1], [], []>} : vector<8x32xbf16>, vector<32x128xbf16>, vector<8x128xf32> -> vector<8x128xf32>
    %c0_6 = arith.constant 0 : index
    %c0_7 = arith.constant 0 : index
    %7 = vector.load %arg4[%c0_6, %c0_7] : memref<10x128xf32, #tpu.memory_space<vmem>>, vector<1x128xf32>
    %8 = vector.broadcast %7 : vector<1x128xf32> to vector<8x128xf32>
    %9 = arith.addf %6, %8 : vector<8x128xf32>
    %cst_8 = arith.constant 0.000000e+00 : f32
    %10 = vector.broadcast %cst_8 : f32 to vector<8x128xf32>
    %11 = arith.maximumf %9, %10 : vector<8x128xf32>
    %12 = arith.truncf %11 : vector<8x128xf32> to vector<8x128xbf16>
    %c0_9 = arith.constant 0 : index
    %c0_10 = arith.constant 0 : index
    %c0_11 = arith.constant 0 : index
    %13 = vector.load %arg3[%c0_9, %c0_10, %c0_11] : memref<9x128x128xbf16, #tpu.memory_space<vmem>>, vector<1x128x128xbf16>
    %14 = vector.shape_cast %13 : vector<1x128x128xbf16> to vector<128x128xbf16>
    %cst_12 = arith.constant dense<0.000000e+00> : vector<8x128xf32>
    %15 = tpu.matmul %12, %14, %cst_12 {dimension_numbers = #tpu.dot_dimension_numbers<[1], [0], [0], [1], [0, 0, 1, 1], [], []>} : vector<8x128xbf16>, vector<128x128xbf16>, vector<8x128xf32> -> vector<8x128xf32>
    %c1 = arith.constant 1 : index
    %c0_13 = arith.constant 0 : index
    %16 = vector.load %arg4[%c1, %c0_13] : memref<10x128xf32, #tpu.memory_space<vmem>>, vector<1x128xf32>
    %17 = vector.broadcast %16 : vector<1x128xf32> to vector<8x128xf32>
    %18 = arith.addf %15, %17 : vector<8x128xf32>
    %cst_14 = arith.constant 0.000000e+00 : f32
    %19 = vector.broadcast %cst_14 : f32 to vector<8x128xf32>
    %20 = arith.maximumf %18, %19 : vector<8x128xf32>
    %21 = arith.truncf %20 : vector<8x128xf32> to vector<8x128xbf16>
    %c1_15 = arith.constant 1 : index
    %c0_16 = arith.constant 0 : index
    %c0_17 = arith.constant 0 : index
    %22 = vector.load %arg3[%c1_15, %c0_16, %c0_17] : memref<9x128x128xbf16, #tpu.memory_space<vmem>>, vector<1x128x128xbf16>
    %23 = vector.shape_cast %22 : vector<1x128x128xbf16> to vector<128x128xbf16>
    %cst_18 = arith.constant dense<0.000000e+00> : vector<8x128xf32>
    %24 = tpu.matmul %21, %23, %cst_18 {dimension_numbers = #tpu.dot_dimension_numbers<[1], [0], [0], [1], [0, 0, 1, 1], [], []>} : vector<8x128xbf16>, vector<128x128xbf16>, vector<8x128xf32> -> vector<8x128xf32>
    %c2 = arith.constant 2 : index
    %c0_19 = arith.constant 0 : index
    %25 = vector.load %arg4[%c2, %c0_19] : memref<10x128xf32, #tpu.memory_space<vmem>>, vector<1x128xf32>
    %26 = vector.broadcast %25 : vector<1x128xf32> to vector<8x128xf32>
    %27 = arith.addf %24, %26 : vector<8x128xf32>
    %cst_20 = arith.constant 0.000000e+00 : f32
    %28 = vector.broadcast %cst_20 : f32 to vector<8x128xf32>
    %29 = arith.maximumf %27, %28 : vector<8x128xf32>
    %30 = arith.truncf %29 : vector<8x128xf32> to vector<8x128xbf16>
    %c2_21 = arith.constant 2 : index
    %c0_22 = arith.constant 0 : index
    %c0_23 = arith.constant 0 : index
    %31 = vector.load %arg3[%c2_21, %c0_22, %c0_23] : memref<9x128x128xbf16, #tpu.memory_space<vmem>>, vector<1x128x128xbf16>
    %32 = vector.shape_cast %31 : vector<1x128x128xbf16> to vector<128x128xbf16>
    %cst_24 = arith.constant dense<0.000000e+00> : vector<8x128xf32>
    %33 = tpu.matmul %30, %32, %cst_24 {dimension_numbers = #tpu.dot_dimension_numbers<[1], [0], [0], [1], [0, 0, 1, 1], [], []>} : vector<8x128xbf16>, vector<128x128xbf16>, vector<8x128xf32> -> vector<8x128xf32>
    %c3 = arith.constant 3 : index
    %c0_25 = arith.constant 0 : index
    %34 = vector.load %arg4[%c3, %c0_25] : memref<10x128xf32, #tpu.memory_space<vmem>>, vector<1x128xf32>
    %35 = vector.broadcast %34 : vector<1x128xf32> to vector<8x128xf32>
    %36 = arith.addf %33, %35 : vector<8x128xf32>
    %cst_26 = arith.constant 0.000000e+00 : f32
    %37 = vector.broadcast %cst_26 : f32 to vector<8x128xf32>
    %38 = arith.maximumf %36, %37 : vector<8x128xf32>
    %39 = arith.truncf %38 : vector<8x128xf32> to vector<8x128xbf16>
    %c3_27 = arith.constant 3 : index
    %c0_28 = arith.constant 0 : index
    %c0_29 = arith.constant 0 : index
    %40 = vector.load %arg3[%c3_27, %c0_28, %c0_29] : memref<9x128x128xbf16, #tpu.memory_space<vmem>>, vector<1x128x128xbf16>
    %41 = vector.shape_cast %40 : vector<1x128x128xbf16> to vector<128x128xbf16>
    %cst_30 = arith.constant dense<0.000000e+00> : vector<8x128xf32>
    %42 = tpu.matmul %39, %41, %cst_30 {dimension_numbers = #tpu.dot_dimension_numbers<[1], [0], [0], [1], [0, 0, 1, 1], [], []>} : vector<8x128xbf16>, vector<128x128xbf16>, vector<8x128xf32> -> vector<8x128xf32>
    %c4 = arith.constant 4 : index
    %c0_31 = arith.constant 0 : index
    %43 = vector.load %arg4[%c4, %c0_31] : memref<10x128xf32, #tpu.memory_space<vmem>>, vector<1x128xf32>
    %44 = vector.broadcast %43 : vector<1x128xf32> to vector<8x128xf32>
    %45 = arith.addf %42, %44 : vector<8x128xf32>
    %cst_32 = arith.constant 0.000000e+00 : f32
    %46 = vector.broadcast %cst_32 : f32 to vector<8x128xf32>
    %47 = arith.maximumf %45, %46 : vector<8x128xf32>
    %48 = arith.truncf %47 : vector<8x128xf32> to vector<8x128xbf16>
    %c4_33 = arith.constant 4 : index
    %c0_34 = arith.constant 0 : index
    %c0_35 = arith.constant 0 : index
    %49 = vector.load %arg3[%c4_33, %c0_34, %c0_35] : memref<9x128x128xbf16, #tpu.memory_space<vmem>>, vector<1x128x128xbf16>
    %50 = vector.shape_cast %49 : vector<1x128x128xbf16> to vector<128x128xbf16>
    %cst_36 = arith.constant dense<0.000000e+00> : vector<8x128xf32>
    %51 = tpu.matmul %48, %50, %cst_36 {dimension_numbers = #tpu.dot_dimension_numbers<[1], [0], [0], [1], [0, 0, 1, 1], [], []>} : vector<8x128xbf16>, vector<128x128xbf16>, vector<8x128xf32> -> vector<8x128xf32>
    %c5 = arith.constant 5 : index
    %c0_37 = arith.constant 0 : index
    %52 = vector.load %arg4[%c5, %c0_37] : memref<10x128xf32, #tpu.memory_space<vmem>>, vector<1x128xf32>
    %53 = vector.broadcast %52 : vector<1x128xf32> to vector<8x128xf32>
    %54 = arith.addf %51, %53 : vector<8x128xf32>
    %cst_38 = arith.constant 0.000000e+00 : f32
    %55 = vector.broadcast %cst_38 : f32 to vector<8x128xf32>
    %56 = arith.maximumf %54, %55 : vector<8x128xf32>
    %57 = arith.truncf %56 : vector<8x128xf32> to vector<8x128xbf16>
    %c5_39 = arith.constant 5 : index
    %c0_40 = arith.constant 0 : index
    %c0_41 = arith.constant 0 : index
    %58 = vector.load %arg3[%c5_39, %c0_40, %c0_41] : memref<9x128x128xbf16, #tpu.memory_space<vmem>>, vector<1x128x128xbf16>
    %59 = vector.shape_cast %58 : vector<1x128x128xbf16> to vector<128x128xbf16>
    %cst_42 = arith.constant dense<0.000000e+00> : vector<8x128xf32>
    %60 = tpu.matmul %57, %59, %cst_42 {dimension_numbers = #tpu.dot_dimension_numbers<[1], [0], [0], [1], [0, 0, 1, 1], [], []>} : vector<8x128xbf16>, vector<128x128xbf16>, vector<8x128xf32> -> vector<8x128xf32>
    %c6 = arith.constant 6 : index
    %c0_43 = arith.constant 0 : index
    %61 = vector.load %arg4[%c6, %c0_43] : memref<10x128xf32, #tpu.memory_space<vmem>>, vector<1x128xf32>
    %62 = vector.broadcast %61 : vector<1x128xf32> to vector<8x128xf32>
    %63 = arith.addf %60, %62 : vector<8x128xf32>
    %cst_44 = arith.constant 0.000000e+00 : f32
    %64 = vector.broadcast %cst_44 : f32 to vector<8x128xf32>
    %65 = arith.maximumf %63, %64 : vector<8x128xf32>
    %66 = arith.truncf %65 : vector<8x128xf32> to vector<8x128xbf16>
    %c6_45 = arith.constant 6 : index
    %c0_46 = arith.constant 0 : index
    %c0_47 = arith.constant 0 : index
    %67 = vector.load %arg3[%c6_45, %c0_46, %c0_47] : memref<9x128x128xbf16, #tpu.memory_space<vmem>>, vector<1x128x128xbf16>
    %68 = vector.shape_cast %67 : vector<1x128x128xbf16> to vector<128x128xbf16>
    %cst_48 = arith.constant dense<0.000000e+00> : vector<8x128xf32>
    %69 = tpu.matmul %66, %68, %cst_48 {dimension_numbers = #tpu.dot_dimension_numbers<[1], [0], [0], [1], [0, 0, 1, 1], [], []>} : vector<8x128xbf16>, vector<128x128xbf16>, vector<8x128xf32> -> vector<8x128xf32>
    %c7 = arith.constant 7 : index
    %c0_49 = arith.constant 0 : index
    %70 = vector.load %arg4[%c7, %c0_49] : memref<10x128xf32, #tpu.memory_space<vmem>>, vector<1x128xf32>
    %71 = vector.broadcast %70 : vector<1x128xf32> to vector<8x128xf32>
    %72 = arith.addf %69, %71 : vector<8x128xf32>
    %cst_50 = arith.constant 0.000000e+00 : f32
    %73 = vector.broadcast %cst_50 : f32 to vector<8x128xf32>
    %74 = arith.maximumf %72, %73 : vector<8x128xf32>
    %75 = arith.truncf %74 : vector<8x128xf32> to vector<8x128xbf16>
    %c7_51 = arith.constant 7 : index
    %c0_52 = arith.constant 0 : index
    %c0_53 = arith.constant 0 : index
    %76 = vector.load %arg3[%c7_51, %c0_52, %c0_53] : memref<9x128x128xbf16, #tpu.memory_space<vmem>>, vector<1x128x128xbf16>
    %77 = vector.shape_cast %76 : vector<1x128x128xbf16> to vector<128x128xbf16>
    %cst_54 = arith.constant dense<0.000000e+00> : vector<8x128xf32>
    %78 = tpu.matmul %75, %77, %cst_54 {dimension_numbers = #tpu.dot_dimension_numbers<[1], [0], [0], [1], [0, 0, 1, 1], [], []>} : vector<8x128xbf16>, vector<128x128xbf16>, vector<8x128xf32> -> vector<8x128xf32>
    %c8 = arith.constant 8 : index
    %c0_55 = arith.constant 0 : index
    %79 = vector.load %arg4[%c8, %c0_55] : memref<10x128xf32, #tpu.memory_space<vmem>>, vector<1x128xf32>
    %80 = vector.broadcast %79 : vector<1x128xf32> to vector<8x128xf32>
    %81 = arith.addf %78, %80 : vector<8x128xf32>
    %cst_56 = arith.constant 0.000000e+00 : f32
    %82 = vector.broadcast %cst_56 : f32 to vector<8x128xf32>
    %83 = arith.maximumf %81, %82 : vector<8x128xf32>
    %84 = arith.truncf %83 : vector<8x128xf32> to vector<8x128xbf16>
    %c8_57 = arith.constant 8 : index
    %c0_58 = arith.constant 0 : index
    %c0_59 = arith.constant 0 : index
    %85 = vector.load %arg3[%c8_57, %c0_58, %c0_59] : memref<9x128x128xbf16, #tpu.memory_space<vmem>>, vector<1x128x128xbf16>
    %86 = vector.shape_cast %85 : vector<1x128x128xbf16> to vector<128x128xbf16>
    %cst_60 = arith.constant dense<0.000000e+00> : vector<8x128xf32>
    %87 = tpu.matmul %84, %86, %cst_60 {dimension_numbers = #tpu.dot_dimension_numbers<[1], [0], [0], [1], [0, 0, 1, 1], [], []>} : vector<8x128xbf16>, vector<128x128xbf16>, vector<8x128xf32> -> vector<8x128xf32>
    %c9 = arith.constant 9 : index
    %c0_61 = arith.constant 0 : index
    %88 = vector.load %arg4[%c9, %c0_61] : memref<10x128xf32, #tpu.memory_space<vmem>>, vector<1x128xf32>
    %89 = vector.broadcast %88 : vector<1x128xf32> to vector<8x128xf32>
    %90 = arith.addf %87, %89 : vector<8x128xf32>
    %91 = vector.extract_strided_slice %90 {offsets = [0, 0], sizes = [8, 16], strides = [1, 1]} : vector<8x128xf32> to vector<8x16xf32>
    %c0_62 = arith.constant 0 : index
    %c0_63 = arith.constant 0 : index
    %92 = vector.load %arg5[%c0_62, %c0_63] : memref<8x16xf32, #tpu.memory_space<vmem>>, vector<8x16xf32>
    tpu.vector_store %arg5[%c0_62, %c0_63], %91 {strides = array<i32>} : memref<8x16xf32, #tpu.memory_space<vmem>>, vector<8x16xf32>,
    return
  }
}

</mosaic_0001>

<bundles_post_ra>
// kernel: tpu_custom_call.1
= control target key start
LH: loop header
LB: loop body
LE: loop exit
PB: predicated region body
PF: predicated region fallthrough
CT: control target
= control target key end

     0   :  { %10 = vsyncpa [#allocation3], 0  ;;  %s1891_s0 = inlined_call_operand.hbm [shape: f32[8,16], index: 0, kind: input, shape index: {}]   ;;  %s1892_s1 = inlined_call_operand.vmem [shape: f32[8,4], index: 1, kind: input, shape index: {}]   ;;  %s1893_s2 = inlined_call_operand.vmem [shape: bf16[32,128], index: 2, kind: input, shape index: {}]   ;;  %s1894_s3 = inlined_call_operand.hbm [shape: bf16[9,128,128], index: 3, kind: input, shape index: {}]   ;;  %s1895_s4 = inlined_call_operand.hbm [shape: f32[10,128], index: 4, kind: input, shape index: {}]   ;;  %s1896_s5 = inlined_call_operand.hbm [shape: f32[8,16], index: 5, kind: output, shape index: {}]  }
   0x1   :  { %11 = vsyncpa [#allocation6], 0 }
   0x2   :  { %12 = vsyncpa [#allocation4], 0  ;;  %s1697_s18 = smov [#allocation5]   ;;  %s1603_s22 = scalar_lea.hbm %s1894_s3, 9216 }
   0x3   :  { %s32_s19 = sshll.u32 %s1697_s18, 4  ;;  %p1604_p0 = scmp.ne.s32.totalorder %s1894_s3, %s1603_s22  ;;  %s33_s19 = int_to_ptr.vmem [resolvable:$true] %s32_s19 }
   0x4   :  { %p1607_p1 = scmp.lt.u32.totalorder %s1603_s22, %s1894_s3 }
   0x6   :  { %p1609_p2 = pnand %p1607_p1, %p1604_p0 }
   0x8   :  { %1612 = shalt.err (!%p1609_p2)
}
   0x9   :  { %s1613_s27 = scalar_lea.vmem %s33_s19, 9216  ;;  %p1618_p4 = scmp.lt.s32.totalorder %s33_s19, %s33_s19 }
   0xa   :  { %p1614_p3 = scmp.ne.s32.totalorder %s33_s19, %s1613_s27  ;;  %p1619_p5 = scmp.lt.s32.totalorder %s1613_s27, %s1613_s27 }
   0xc   :  { %p1620_p6 = por %p1619_p5, %p1618_p4 }
   0xe   :  { %p1621_p7 = pnand %p1620_p6, %p1614_p3 }
  0x10   :  { %1624 = shalt.err (!%p1621_p7)
}
  0x11   :  { %s1698_s28 = smov 64   ;;  %s1699_s29 = smov 4  }
  0x12   :  { %38 = dma.hbm_to_vmem [thread:$0]  %s1894_s3, 9216, %s33_s19, [#allocation6], %s1698_s28, %s1698_s28, %s1699_s29  }
  0x13   :  { %s1700_s7 = smov [#allocation2]   ;;  %s1701_s9 = smov [#allocation7]  }
  0x14   :  { %s19_s8 = sshll.u32 %s1700_s7, 4  ;;  %s44_s10 = sshll.u32 %s1701_s9, 4  ;;  %s20_s8 = int_to_ptr.vmem [resolvable:$true] %s19_s8  ;;  %s45_s10 = int_to_ptr.vmem [resolvable:$true] %s44_s10 }
  0x15   :  { %s1625_s13 = scalar_lea.hbm %s1891_s0, 128 }
  0x16   :  { %p1626_p8 = scmp.ne.s32.totalorder %s1891_s0, %s1625_s13  ;;  %p1629_p9 = scmp.lt.u32.totalorder %s1625_s13, %s1891_s0 }
  0x18   :  { %p1631_p10 = pnand %p1629_p9, %p1626_p8 }
  0x1a   :  { %1634 = shalt.err (!%p1631_p10)
}
  0x1b   :  { %s1635_s3 = scalar_lea.vmem %s20_s8, 128  ;;  %p1640_p12 = scmp.lt.s32.totalorder %s20_s8, %s20_s8 }
  0x1c   :  { %p1636_p11 = scmp.ne.s32.totalorder %s20_s8, %s1635_s3  ;;  %p1641_p13 = scmp.lt.s32.totalorder %s1635_s3, %s1635_s3 }
  0x1e   :  { %p1642_p0 = por %p1641_p13, %p1640_p12 }
  0x20   :  { %p1643_p1 = pnand %p1642_p0, %p1636_p11 }
  0x22   :  { %1646 = shalt.err (!%p1643_p1)
}
  0x23   :  { %22 = dma.hbm_to_vmem [thread:$0]  %s1891_s0, 128, %s20_s8, [#allocation3]  }
  0x24   :  { %s1647_s22 = scalar_lea.hbm %s1895_s4, 256 }
  0x25   :  { %p1648_p2 = scmp.ne.s32.totalorder %s1895_s4, %s1647_s22  ;;  %p1651_p3 = scmp.lt.u32.totalorder %s1647_s22, %s1895_s4 }
  0x27   :  { %p1653_p4 = pnand %p1651_p3, %p1648_p2 }
  0x29   :  { %1656 = shalt.err (!%p1653_p4)
}
  0x2a   :  { %s1657_s27 = scalar_lea.vmem %s45_s10, 256  ;;  %p1662_p6 = scmp.lt.s32.totalorder %s45_s10, %s45_s10 }
  0x2b   :  { %p1658_p5 = scmp.ne.s32.totalorder %s45_s10, %s1657_s27  ;;  %p1663_p7 = scmp.lt.s32.totalorder %s1657_s27, %s1657_s27 }
  0x2d   :  { %p1664_p8 = por %p1663_p7, %p1662_p6 }
  0x2f   :  { %p1665_p9 = pnand %p1664_p8, %p1658_p5 }
  0x31   :  { %1668 = shalt.err (!%p1665_p9)
}
  0x32   :  { %s1702_s0 = smov 128   ;;  %s1703_s28 = smov 8  }
  0x33   :  { %50 = dma.hbm_to_vmem [thread:$0]  %s1895_s4, 256, %s45_s10, [#allocation6], %s1702_s0, %s1702_s0, %s1703_s28  }
  0x34   :  { %1691 = dma.done.wait [#allocation3], 128  }
  0x35   :  { %1692 = vsyncadd [#allocation3], 4294967168 }
  0x36   :  { %1693 = dma.done.wait [#allocation6], 9472  }
  0x37   :  { %1694 = vsyncadd [#allocation6], 4294957824  ;;  %v1704_v0 = vmov 0.0   ;;  %vm1705_vm0 = vmmov 0   ;;  %v62_v1 = vld [vmem:[%s1892_s1] sm:$0xff]  ;;  %s1706_s4 = smov 16  }
  0x38   :  { %1330 = vmatprep.subr.bf16.mxu0 %v1704_v0  ;;  %1338 = vmatprep.subr.bf16.mxu1 %v1704_v0  ;;  %v1529_v2 = vld [vmem:[%s1893_s2] sm:$0xff]   ;;  %v1530_v3 = vld [vmem:[%s1893_s2 + $0x8] sm:$0xff]   ;;  %v1532_v5 = vld [vmem:[#allocation5 + $0x8] sm:$0xff]   ;;  %vm67_vm1 = vcmask 130048   ;;  %vm69_vm2 = vcmask 162816   ;;  %vm93_vm3 = vcmask 261120  }
  0x39   :  { %1334 = vmatprep.mubr.msk.bf16.mxu0 %vm1705_vm0, %v1704_v0  ;;  %1354 = vmatprep.mubr.msk.bf16.mxu1 %vm1705_vm0, %v1704_v0  ;;  %v1531_v4 = vld [vmem:[#allocation5] sm:$0xff]   ;;  %v1533_v6 = vld [vmem:[#allocation5 + $0x10] sm:$0xff]   ;;  %v1534_v7 = vld [vmem:[#allocation5 + $0x18] sm:$0xff]   ;;  %s1707_s1 = smov [#allocation8]  }
  0x3a   :  { %64 = vrot.lane.b32.xlu0 %v62_v1, %s1706_s4  ;;  %1331 = vmatpush3.bf16.msra.mxu0 %v1529_v2  ;;  %v1535_v8 = vld [vmem:[#allocation5 + $0x20] sm:$0xff]   ;;  %v1536_v9 = vld [vmem:[#allocation5 + $0x28] sm:$0xff]   ;;  %v61_v10 = vld [vmem:[#allocation2] sm:$0xff]  ;;  %s1151_s2 = sshll.u32 %s1707_s1, 4  ;;  %s1152_s2 = int_to_ptr.vmem [resolvable:$true] %s1151_s2 }
  0x3b   :  { %1332 = vmatprep.subr.bf16.mxu0 %v1704_v0  ;;  %1339 = vmatpush3.bf16.msra.mxu1 %v1531_v4  ;;  %v1537_v15 = vld [vmem:[#allocation5 + $0x30] sm:$0xff]   ;;  %v1538_v16 = vld [vmem:[#allocation5 + $0x38] sm:$0xff]   ;;  %v1539_v17 = vld [vmem:[#allocation5 + $0x40] sm:$0xff]   ;;  %s1669_s12 = scalar_lea.vmem %s1152_s2, 128  ;;  %p1674_p11 = scmp.lt.s32.totalorder %s1152_s2, %s1152_s2 }
  0x3c   :  { %1340 = vmatprep.subr.bf16.mxu1 %v1704_v0  ;;  %v1540_v18 = vld [vmem:[#allocation5 + $0x48] sm:$0xff]   ;;  %v1541_v19 = vld [vmem:[#allocation5 + $0x50] sm:$0xff]   ;;  %v1542_v20 = vld [vmem:[#allocation5 + $0x58] sm:$0xff]   ;;  %p1670_p10 = scmp.ne.s32.totalorder %s1152_s2, %s1669_s12  ;;  %p1675_p12 = scmp.lt.s32.totalorder %s1669_s12, %s1669_s12 }
  0x3d   :  { %v1543_v21 = vld [vmem:[#allocation5 + $0x60] sm:$0xff]   ;;  %v1544_v22 = vld [vmem:[#allocation5 + $0x68] sm:$0xff]   ;;  %v1545_v31 = vld [vmem:[#allocation5 + $0x70] sm:$0xff]  }
  0x3e   :  { %1333 = vmatpush3.bf16.msra.mxu0 %v1530_v3  ;;  %v1161_v23 = vld [vmem:[#allocation7] ss:$0 sm:$0xff]  ;;  %v1546_v32 = vld [vmem:[#allocation5 + $0x78] sm:$0xff]   ;;  %v1548_v34 = vld [vmem:[#allocation5 + $0x88] sm:$0xff]   ;;  %p1676_p13 = por %p1675_p12, %p1674_p11 }
  0x3f   :  { %1358 = vmatprep.subr.bf16.mxu0 %v1704_v0  ;;  %1341 = vmatpush3.bf16.msra.mxu1 %v1532_v5  ;;  %v1547_v33 = vld [vmem:[#allocation5 + $0x80] sm:$0xff]   ;;  %v1549_v35 = vld [vmem:[#allocation5 + $0x90] sm:$0xff]   ;;  %v1550_v36 = vld [vmem:[#allocation5 + $0x98] sm:$0xff]  }
  0x40   :  { %1342 = vmatprep.subr.bf16.mxu1 %v1704_v0  ;;  %v1551_v37 = vld [vmem:[#allocation5 + $0xa0] sm:$0xff]   ;;  %v1552_v38 = vld [vmem:[#allocation5 + $0xa8] sm:$0xff]   ;;  %v1553_v47 = vld [vmem:[#allocation5 + $0xb0] sm:$0xff]   ;;  %p1677_p0 = pnand %p1676_p13, %p1670_p10 }
  0x41   :  { %v1165_v39 = vld [vmem:[#allocation7 + $0x1] ss:$0 sm:$0xff]  ;;  %v1554_v48 = vld [vmem:[#allocation5 + $0xb8] sm:$0xff]   ;;  %v1556_v50 = vld [vmem:[#allocation5 + $0xc8] sm:$0xff]  }
  0x42   :  { %v1555_v49 = vld [vmem:[#allocation5 + $0xc0] sm:$0xff]   ;;  %v1557_v51 = vld [vmem:[#allocation5 + $0xd0] sm:$0xff]   ;;  %v1558_v52 = vld [vmem:[#allocation5 + $0xd8] sm:$0xff]  }
  0x43   :  { %1343 = vmatpush3.bf16.msra.mxu1 %v1533_v6  ;;  %v1559_v53 = vld [vmem:[#allocation5 + $0xe0] sm:$0xff]   ;;  %v1560_v54 = vld [vmem:[#allocation5 + $0xe8] sm:$0xff]   ;;  %v1561_v63 = vld [vmem:[#allocation5 + $0xf0] sm:$0xff]  }
  0x44   :  { %1344 = vmatprep.subr.bf16.mxu1 %v1704_v0  ;;  %v1174_v55 = vld [vmem:[#allocation7 + $0x2] ss:$0 sm:$0xff]  ;;  %v1562_v1 = vld [vmem:[#allocation5 + $0xf8] sm:$0xff]   ;;  %v1564_v3 = vld [vmem:[#allocation5 + $0x108] sm:$0xff]  }
  0x45   :  { %v1563_v2 = vld [vmem:[#allocation5 + $0x100] sm:$0xff]   ;;  %v1565_v4 = vld [vmem:[#allocation5 + $0x110] sm:$0xff]   ;;  %v1566_v5 = vld [vmem:[#allocation5 + $0x118] sm:$0xff]  }
  0x46   :  { %v1567_v6 = vld [vmem:[#allocation5 + $0x120] sm:$0xff]  }
  0x47   :  { %1345 = vmatpush3.bf16.msra.mxu1 %v1534_v7  ;;  %v1568_v7 = vld [vmem:[#allocation5 + $0x128] sm:$0xff]  }
  0x48   :  { %1346 = vmatprep.subr.bf16.mxu1 %v1704_v0 }
  0x4b   :  { %1347 = vmatpush3.bf16.msra.mxu1 %v1535_v8  ;;  %v1183_v8 = vld [vmem:[#allocation7 + $0x3] ss:$0 sm:$0xff] }
  0x4c   :  { %1348 = vmatprep.subr.bf16.mxu1 %v1704_v0 }
  0x4f   :  { %1349 = vmatpush3.bf16.msra.mxu1 %v1536_v9 }
  0x50   :  { %1350 = vmatprep.subr.bf16.mxu1 %v1704_v0 }
  0x53   :  { %1351 = vmatpush3.bf16.msra.mxu1 %v1537_v15 }
  0x54   :  { %1352 = vmatprep.subr.bf16.mxu1 %v1704_v0 }
  0x57   :  { %1353 = vmatpush3.bf16.msra.mxu1 %v1538_v16  ;;  %v1569_v16 = vld [vmem:[#allocation5 + $0x130] sm:$0xff]  }
  0x58   :  { %1378 = vmatprep.subr.bf16.mxu1 %v1704_v0 }
  0xac   :  { %v65_v11 = vpop.permute.xlu0 %64 }
  0xad   :  { %v68_v12 = vsel %vm67_vm1, %v61_v10, %v65_v11 }
  0xae   :  { %v70_v13 = vsel %vm69_vm2, %v68_v12, 0.0 }
  0xaf   :  { %v71_v14 = vpack.c.bf16 %v70_v13, %v70_v13 }
  0xb1   :  { %1335 = vmatmul.mubr.msk.bf16.vlgmr.msra.gmra.mrb[0].mxu0 %vm93_vm3, %v71_v14 }
  0xb2   :  { %1374 = vmatprep.mubr.msk.bf16.mxu0 %vm1705_vm0, %v1704_v0  ;;  %1359 = vmatpush3.bf16.msra.mxu0 %v1539_v17  ;;  %v1570_v17 = vld [vmem:[#allocation5 + $0x138] sm:$0xff]  }
  0xb3   :  { %1360 = vmatprep.subr.bf16.mxu0 %v1704_v0 }
  0xb6   :  { %1361 = vmatpush3.bf16.msra.mxu0 %v1540_v18  ;;  %v1571_v18 = vld [vmem:[#allocation5 + $0x140] sm:$0xff]  }
  0xb7   :  { %1362 = vmatprep.subr.bf16.mxu0 %v1704_v0 }
  0xba   :  { %1363 = vmatpush3.bf16.msra.mxu0 %v1541_v19  ;;  %v1572_v19 = vld [vmem:[#allocation5 + $0x148] sm:$0xff]  }
  0xbb   :  { %1364 = vmatprep.subr.bf16.mxu0 %v1704_v0 }
  0xbe   :  { %1365 = vmatpush3.bf16.msra.mxu0 %v1542_v20  ;;  %v1573_v20 = vld [vmem:[#allocation5 + $0x150] sm:$0xff]  }
  0xbf   :  { %1366 = vmatprep.subr.bf16.mxu0 %v1704_v0 }
  0xc2   :  { %1367 = vmatpush3.bf16.msra.mxu0 %v1543_v21  ;;  %v1574_v21 = vld [vmem:[#allocation5 + $0x158] sm:$0xff]  }
  0xc3   :  { %1368 = vmatprep.subr.bf16.mxu0 %v1704_v0 }
  0xc6   :  { %1369 = vmatpush3.bf16.msra.mxu0 %v1544_v22  ;;  %v1575_v22 = vld [vmem:[#allocation5 + $0x160] sm:$0xff]  }
  0xc7   :  { %1370 = vmatprep.subr.bf16.mxu0 %v1704_v0 }
  0xca   :  { %1371 = vmatpush3.bf16.msra.mxu0 %v1545_v31 }
  0xcb   :  { %1372 = vmatprep.subr.bf16.mxu0 %v1704_v0 }
  0xce   :  { %1373 = vmatpush3.bf16.msra.mxu0 %v1546_v32  ;;  %v1577_v32 = vld [vmem:[#allocation5 + $0x170] sm:$0xff]  }
  0xcf   :  { %1398 = vmatprep.subr.bf16.mxu0 %v1704_v0 }
 0x184   :  { %v131_v24 = vpop.f32.mrb[0].mxu0 }
 0x185   :  { %v132_v25 = vadd.f32 %v1161_v23, %v131_v24  ;;  %v1336_v26 = vpop.f32.mrb[1].mxu0  ;;  %v1576_v23 = vld [vmem:[#allocation5 + $0x168] sm:$0xff]   ;;  %v1192_v24 = vld [vmem:[#allocation7 + $0x4] ss:$0 sm:$0xff] }
 0x186   :  { %v134_v27 = vpop.f32.mrb[2].mxu0 }
 0x187   :  { %v137_v28 = vmax.f32 %v132_v25, 0.0  ;;  %v1337_v29 = vpop.f32.mrb[3].mxu0 }
 0x189   :  { %v138_v30 = vpack.c.bf16 %v137_v28, %v137_v28 }
 0x18b   :  { %1355 = vmatmul.mubr.bf16.vlgmr.msra.gmra.mrb[0].mxu1 %v138_v30 }
 0x18c   :  { %1394 = vmatprep.mubr.msk.bf16.mxu1 %vm1705_vm0, %v1704_v0  ;;  %1379 = vmatpush3.bf16.msra.mxu1 %v1547_v33  ;;  %v1578_v33 = vld [vmem:[#allocation5 + $0x178] sm:$0xff]  }
 0x18d   :  { %1380 = vmatprep.subr.bf16.mxu1 %v1704_v0 }
 0x190   :  { %1381 = vmatpush3.bf16.msra.mxu1 %v1548_v34  ;;  %v1579_v34 = vld [vmem:[#allocation5 + $0x180] sm:$0xff]  }
 0x191   :  { %1382 = vmatprep.subr.bf16.mxu1 %v1704_v0 }
 0x194   :  { %1383 = vmatpush3.bf16.msra.mxu1 %v1549_v35  ;;  %v1580_v35 = vld [vmem:[#allocation5 + $0x188] sm:$0xff]  }
 0x195   :  { %1384 = vmatprep.subr.bf16.mxu1 %v1704_v0 }
 0x198   :  { %1385 = vmatpush3.bf16.msra.mxu1 %v1550_v36  ;;  %v1581_v36 = vld [vmem:[#allocation5 + $0x190] sm:$0xff]  }
 0x199   :  { %1386 = vmatprep.subr.bf16.mxu1 %v1704_v0 }
 0x19c   :  { %1387 = vmatpush3.bf16.msra.mxu1 %v1551_v37  ;;  %v1582_v37 = vld [vmem:[#allocation5 + $0x198] sm:$0xff]  }
 0x19d   :  { %1388 = vmatprep.subr.bf16.mxu1 %v1704_v0 }
 0x1a0   :  { %1389 = vmatpush3.bf16.msra.mxu1 %v1552_v38  ;;  %v1583_v38 = vld [vmem:[#allocation5 + $0x1a0] sm:$0xff]  }
 0x1a1   :  { %1390 = vmatprep.subr.bf16.mxu1 %v1704_v0 }
 0x1a4   :  { %1391 = vmatpush3.bf16.msra.mxu1 %v1553_v47 }
 0x1a5   :  { %1392 = vmatprep.subr.bf16.mxu1 %v1704_v0 }
 0x1a8   :  { %1393 = vmatpush3.bf16.msra.mxu1 %v1554_v48  ;;  %v1585_v48 = vld [vmem:[#allocation5 + $0x1b0] sm:$0xff]  }
 0x1a9   :  { %1418 = vmatprep.subr.bf16.mxu1 %v1704_v0 }
 0x25e   :  { %v242_v40 = vpop.f32.mrb[0].mxu1 }
 0x25f   :  { %v243_v41 = vadd.f32 %v1165_v39, %v242_v40  ;;  %v1356_v42 = vpop.f32.mrb[1].mxu1  ;;  %v1584_v39 = vld [vmem:[#allocation5 + $0x1a8] sm:$0xff]   ;;  %v1201_v40 = vld [vmem:[#allocation7 + $0x5] ss:$0 sm:$0xff] }
 0x260   :  { %v245_v43 = vpop.f32.mrb[2].mxu1 }
 0x261   :  { %v248_v44 = vmax.f32 %v243_v41, 0.0  ;;  %v1357_v45 = vpop.f32.mrb[3].mxu1 }
 0x263   :  { %v249_v46 = vpack.c.bf16 %v248_v44, %v248_v44 }
 0x265   :  { %1375 = vmatmul.mubr.bf16.vlgmr.msra.gmra.mrb[4].mxu0 %v249_v46 }
 0x266   :  { %1414 = vmatprep.mubr.msk.bf16.mxu0 %vm1705_vm0, %v1704_v0  ;;  %1399 = vmatpush3.bf16.msra.mxu0 %v1555_v49  ;;  %v1586_v49 = vld [vmem:[#allocation5 + $0x1b8] sm:$0xff]  }
 0x267   :  { %1400 = vmatprep.subr.bf16.mxu0 %v1704_v0 }
 0x26a   :  { %1401 = vmatpush3.bf16.msra.mxu0 %v1556_v50  ;;  %v1587_v50 = vld [vmem:[#allocation5 + $0x1c0] sm:$0xff]  }
 0x26b   :  { %1402 = vmatprep.subr.bf16.mxu0 %v1704_v0 }
 0x26e   :  { %1403 = vmatpush3.bf16.msra.mxu0 %v1557_v51  ;;  %v1588_v51 = vld [vmem:[#allocation5 + $0x1c8] sm:$0xff]  }
 0x26f   :  { %1404 = vmatprep.subr.bf16.mxu0 %v1704_v0 }
 0x272   :  { %1405 = vmatpush3.bf16.msra.mxu0 %v1558_v52  ;;  %v1589_v52 = vld [vmem:[#allocation5 + $0x1d0] sm:$0xff]  }
 0x273   :  { %1406 = vmatprep.subr.bf16.mxu0 %v1704_v0 }
 0x276   :  { %1407 = vmatpush3.bf16.msra.mxu0 %v1559_v53  ;;  %v1590_v53 = vld [vmem:[#allocation5 + $0x1d8] sm:$0xff]  }
 0x277   :  { %1408 = vmatprep.subr.bf16.mxu0 %v1704_v0 }
 0x27a   :  { %1409 = vmatpush3.bf16.msra.mxu0 %v1560_v54  ;;  %v1591_v54 = vld [vmem:[#allocation5 + $0x1e0] sm:$0xff]  }
 0x27b   :  { %1410 = vmatprep.subr.bf16.mxu0 %v1704_v0 }
 0x27e   :  { %1411 = vmatpush3.bf16.msra.mxu0 %v1561_v63 }
 0x27f   :  { %1412 = vmatprep.subr.bf16.mxu0 %v1704_v0 }
 0x282   :  { %1413 = vmatpush3.bf16.msra.mxu0 %v1562_v1  ;;  %v1593_v1 = vld [vmem:[#allocation5 + $0x1f0] sm:$0xff]  }
 0x283   :  { %1438 = vmatprep.subr.bf16.mxu0 %v1704_v0 }
 0x338   :  { %v354_v56 = vpop.f32.mrb[4].mxu0 }
 0x339   :  { %v355_v57 = vadd.f32 %v1174_v55, %v354_v56  ;;  %v1376_v58 = vpop.f32.mrb[5].mxu0  ;;  %v1592_v55 = vld [vmem:[#allocation5 + $0x1e8] sm:$0xff]   ;;  %v1210_v56 = vld [vmem:[#allocation7 + $0x6] ss:$0 sm:$0xff] }
 0x33a   :  { %v357_v59 = vpop.f32.mrb[6].mxu0 }
 0x33b   :  { %v360_v60 = vmax.f32 %v355_v57, 0.0  ;;  %v1377_v61 = vpop.f32.mrb[7].mxu0 }
 0x33d   :  { %v361_v62 = vpack.c.bf16 %v360_v60, %v360_v60 }
 0x33f   :  { %1395 = vmatmul.mubr.bf16.vlgmr.msra.gmra.mrb[4].mxu1 %v361_v62 }
 0x340   :  { %1434 = vmatprep.mubr.msk.bf16.mxu1 %vm1705_vm0, %v1704_v0  ;;  %1419 = vmatpush3.bf16.msra.mxu1 %v1563_v2  ;;  %v1594_v2 = vld [vmem:[#allocation5 + $0x1f8] sm:$0xff]  }
 0x341   :  { %1420 = vmatprep.subr.bf16.mxu1 %v1704_v0 }
 0x344   :  { %1421 = vmatpush3.bf16.msra.mxu1 %v1564_v3  ;;  %v1595_v3 = vld [vmem:[#allocation5 + $0x200] sm:$0xff]  }
 0x345   :  { %1422 = vmatprep.subr.bf16.mxu1 %v1704_v0 }
 0x348   :  { %1423 = vmatpush3.bf16.msra.mxu1 %v1565_v4  ;;  %v1596_v4 = vld [vmem:[#allocation5 + $0x208] sm:$0xff]  }
 0x349   :  { %1424 = vmatprep.subr.bf16.mxu1 %v1704_v0 }
 0x34c   :  { %1425 = vmatpush3.bf16.msra.mxu1 %v1566_v5  ;;  %v1597_v5 = vld [vmem:[#allocation5 + $0x210] sm:$0xff]  }
 0x34d   :  { %1426 = vmatprep.subr.bf16.mxu1 %v1704_v0 }
 0x350   :  { %1427 = vmatpush3.bf16.msra.mxu1 %v1567_v6  ;;  %v1598_v6 = vld [vmem:[#allocation5 + $0x218] sm:$0xff]  }
 0x351   :  { %1428 = vmatprep.subr.bf16.mxu1 %v1704_v0 }
 0x354   :  { %1429 = vmatpush3.bf16.msra.mxu1 %v1568_v7  ;;  %v1599_v7 = vld [vmem:[#allocation5 + $0x220] sm:$0xff]  }
 0x355   :  { %1430 = vmatprep.subr.bf16.mxu1 %v1704_v0 }
 0x358   :  { %1431 = vmatpush3.bf16.msra.mxu1 %v1569_v16 }
 0x359   :  { %1432 = vmatprep.subr.bf16.mxu1 %v1704_v0 }
 0x35c   :  { %1433 = vmatpush3.bf16.msra.mxu1 %v1570_v17  ;;  %v1601_v17 = vld [vmem:[#allocation5 + $0x230] sm:$0xff]  }
 0x35d   :  { %1458 = vmatprep.subr.bf16.mxu1 %v1704_v0 }
 0x412   :  { %v466_v9 = vpop.f32.mrb[4].mxu1 }
 0x413   :  { %v467_v10 = vadd.f32 %v1183_v8, %v466_v9  ;;  %v1396_v11 = vpop.f32.mrb[5].mxu1  ;;  %v1600_v8 = vld [vmem:[#allocation5 + $0x228] sm:$0xff]   ;;  %v1219_v9 = vld [vmem:[#allocation7 + $0x7] ss:$0 sm:$0xff] }
 0x414   :  { %v469_v12 = vpop.f32.mrb[6].mxu1 }
 0x415   :  { %v472_v13 = vmax.f32 %v467_v10, 0.0  ;;  %v1397_v14 = vpop.f32.mrb[7].mxu1 }
 0x417   :  { %v473_v15 = vpack.c.bf16 %v472_v13, %v472_v13 }
 0x419   :  { %1415 = vmatmul.mubr.bf16.vlgmr.msra.gmra.mrb[8].mxu0 %v473_v15 }
 0x41a   :  { %1454 = vmatprep.mubr.msk.bf16.mxu0 %vm1705_vm0, %v1704_v0  ;;  %1439 = vmatpush3.bf16.msra.mxu0 %v1571_v18  ;;  %v1602_v18 = vld [vmem:[#allocation5 + $0x238] sm:$0xff]  }
 0x41b   :  { %1440 = vmatprep.subr.bf16.mxu0 %v1704_v0 }
 0x41e   :  { %1441 = vmatpush3.bf16.msra.mxu0 %v1572_v19  ;;  %v1228_v19 = vld [vmem:[#allocation7 + $0x8] ss:$0 sm:$0xff] }
 0x41f   :  { %1442 = vmatprep.subr.bf16.mxu0 %v1704_v0 }
 0x422   :  { %1443 = vmatpush3.bf16.msra.mxu0 %v1573_v20 }
 0x423   :  { %1444 = vmatprep.subr.bf16.mxu0 %v1704_v0 }
 0x426   :  { %1445 = vmatpush3.bf16.msra.mxu0 %v1574_v21 }
 0x427   :  { %1446 = vmatprep.subr.bf16.mxu0 %v1704_v0 }
 0x42a   :  { %1447 = vmatpush3.bf16.msra.mxu0 %v1575_v22 }
 0x42b   :  { %1448 = vmatprep.subr.bf16.mxu0 %v1704_v0 }
 0x42e   :  { %1449 = vmatpush3.bf16.msra.mxu0 %v1576_v23 }
 0x42f   :  { %1450 = vmatprep.subr.bf16.mxu0 %v1704_v0 }
 0x432   :  { %1451 = vmatpush3.bf16.msra.mxu0 %v1577_v32 }
 0x433   :  { %1452 = vmatprep.subr.bf16.mxu0 %v1704_v0 }
 0x436   :  { %1453 = vmatpush3.bf16.msra.mxu0 %v1578_v33 }
 0x437   :  { %1478 = vmatprep.subr.bf16.mxu0 %v1704_v0 }
 0x4ec   :  { %v578_v25 = vpop.f32.mrb[8].mxu0 }
 0x4ed   :  { %v579_v26 = vadd.f32 %v1192_v24, %v578_v25  ;;  %v1416_v27 = vpop.f32.mrb[9].mxu0 }
 0x4ee   :  { %v581_v28 = vpop.f32.mrb[10].mxu0  ;;  %v1237_v27 = vld [vmem:[#allocation7 + $0x9] ss:$0 sm:$0xff] }
 0x4ef   :  { %v584_v29 = vmax.f32 %v579_v26, 0.0  ;;  %v1417_v30 = vpop.f32.mrb[11].mxu0 }
 0x4f1   :  { %v585_v31 = vpack.c.bf16 %v584_v29, %v584_v29 }
 0x4f3   :  { %1435 = vmatmul.mubr.bf16.vlgmr.msra.gmra.mrb[8].mxu1 %v585_v31 }
 0x4f4   :  { %1474 = vmatprep.mubr.msk.bf16.mxu1 %vm1705_vm0, %v1704_v0  ;;  %1459 = vmatpush3.bf16.msra.mxu1 %v1579_v34 }
 0x4f5   :  { %1460 = vmatprep.subr.bf16.mxu1 %v1704_v0 }
 0x4f8   :  { %1461 = vmatpush3.bf16.msra.mxu1 %v1580_v35 }
 0x4f9   :  { %1462 = vmatprep.subr.bf16.mxu1 %v1704_v0 }
 0x4fc   :  { %1463 = vmatpush3.bf16.msra.mxu1 %v1581_v36 }
 0x4fd   :  { %1464 = vmatprep.subr.bf16.mxu1 %v1704_v0 }
 0x500   :  { %1465 = vmatpush3.bf16.msra.mxu1 %v1582_v37 }
 0x501   :  { %1466 = vmatprep.subr.bf16.mxu1 %v1704_v0 }
 0x504   :  { %1467 = vmatpush3.bf16.msra.mxu1 %v1583_v38 }
 0x505   :  { %1468 = vmatprep.subr.bf16.mxu1 %v1704_v0 }
 0x508   :  { %1469 = vmatpush3.bf16.msra.mxu1 %v1584_v39 }
 0x509   :  { %1470 = vmatprep.subr.bf16.mxu1 %v1704_v0 }
 0x50c   :  { %1471 = vmatpush3.bf16.msra.mxu1 %v1585_v48 }
 0x50d   :  { %1472 = vmatprep.subr.bf16.mxu1 %v1704_v0 }
 0x510   :  { %1473 = vmatpush3.bf16.msra.mxu1 %v1586_v49 }
 0x511   :  { %1498 = vmatprep.subr.bf16.mxu1 %v1704_v0 }
 0x5c6   :  { %v690_v41 = vpop.f32.mrb[8].mxu1 }
 0x5c7   :  { %v691_v42 = vadd.f32 %v1201_v40, %v690_v41  ;;  %v1436_v43 = vpop.f32.mrb[9].mxu1 }
 0x5c8   :  { %v693_v44 = vpop.f32.mrb[10].mxu1 }
 0x5c9   :  { %v696_v45 = vmax.f32 %v691_v42, 0.0  ;;  %v1437_v46 = vpop.f32.mrb[11].mxu1 }
 0x5cb   :  { %v697_v47 = vpack.c.bf16 %v696_v45, %v696_v45 }
 0x5cd   :  { %1455 = vmatmul.mubr.bf16.vlgmr.msra.gmra.mrb[12].mxu0 %v697_v47 }
 0x5ce   :  { %1494 = vmatprep.mubr.msk.bf16.mxu0 %vm1705_vm0, %v1704_v0  ;;  %1479 = vmatpush3.bf16.msra.mxu0 %v1587_v50 }
 0x5cf   :  { %1480 = vmatprep.subr.bf16.mxu0 %v1704_v0 }
 0x5d2   :  { %1481 = vmatpush3.bf16.msra.mxu0 %v1588_v51 }
 0x5d3   :  { %1482 = vmatprep.subr.bf16.mxu0 %v1704_v0 }
 0x5d6   :  { %1483 = vmatpush3.bf16.msra.mxu0 %v1589_v52 }
 0x5d7   :  { %1484 = vmatprep.subr.bf16.mxu0 %v1704_v0 }
 0x5da   :  { %1485 = vmatpush3.bf16.msra.mxu0 %v1590_v53 }
 0x5db   :  { %1486 = vmatprep.subr.bf16.mxu0 %v1704_v0 }
 0x5de   :  { %1487 = vmatpush3.bf16.msra.mxu0 %v1591_v54 }
 0x5df   :  { %1488 = vmatprep.subr.bf16.mxu0 %v1704_v0 }
 0x5e2   :  { %1489 = vmatpush3.bf16.msra.mxu0 %v1592_v55 }
 0x5e3   :  { %1490 = vmatprep.subr.bf16.mxu0 %v1704_v0 }
 0x5e6   :  { %1491 = vmatpush3.bf16.msra.mxu0 %v1593_v1 }
 0x5e7   :  { %1492 = vmatprep.subr.bf16.mxu0 %v1704_v0 }
 0x5ea   :  { %1493 = vmatpush3.bf16.msra.mxu0 %v1594_v2 }
 0x6a0   :  { %v802_v57 = vpop.f32.mrb[12].mxu0 }
 0x6a1   :  { %v803_v58 = vadd.f32 %v1210_v56, %v802_v57  ;;  %v1456_v59 = vpop.f32.mrb[13].mxu0 }
 0x6a2   :  { %v805_v60 = vpop.f32.mrb[14].mxu0 }
 0x6a3   :  { %v808_v61 = vmax.f32 %v803_v58, 0.0  ;;  %v1457_v62 = vpop.f32.mrb[15].mxu0 }
 0x6a5   :  { %v809_v63 = vpack.c.bf16 %v808_v61, %v808_v61 }
 0x6a7   :  { %1475 = vmatmul.mubr.bf16.vlgmr.msra.gmra.mrb[12].mxu1 %v809_v63 }
 0x6a8   :  { %1514 = vmatprep.mubr.msk.bf16.mxu1 %vm1705_vm0, %v1704_v0  ;;  %1499 = vmatpush3.bf16.msra.mxu1 %v1595_v3 }
 0x6a9   :  { %1500 = vmatprep.subr.bf16.mxu1 %v1704_v0 }
 0x6ac   :  { %1501 = vmatpush3.bf16.msra.mxu1 %v1596_v4 }
 0x6ad   :  { %1502 = vmatprep.subr.bf16.mxu1 %v1704_v0 }
 0x6b0   :  { %1503 = vmatpush3.bf16.msra.mxu1 %v1597_v5 }
 0x6b1   :  { %1504 = vmatprep.subr.bf16.mxu1 %v1704_v0 }
 0x6b4   :  { %1505 = vmatpush3.bf16.msra.mxu1 %v1598_v6 }
 0x6b5   :  { %1506 = vmatprep.subr.bf16.mxu1 %v1704_v0 }
 0x6b8   :  { %1507 = vmatpush3.bf16.msra.mxu1 %v1599_v7 }
 0x6b9   :  { %1508 = vmatprep.subr.bf16.mxu1 %v1704_v0 }
 0x6bc   :  { %1509 = vmatpush3.bf16.msra.mxu1 %v1600_v8 }
 0x6bd   :  { %1510 = vmatprep.subr.bf16.mxu1 %v1704_v0 }
 0x6c0   :  { %1511 = vmatpush3.bf16.msra.mxu1 %v1601_v17 }
 0x6c1   :  { %1512 = vmatprep.subr.bf16.mxu1 %v1704_v0 }
 0x6c4   :  { %1513 = vmatpush3.bf16.msra.mxu1 %v1602_v18 }
 0x77a   :  { %v914_v10 = vpop.f32.mrb[12].mxu1 }
 0x77b   :  { %v915_v11 = vadd.f32 %v1219_v9, %v914_v10  ;;  %v1476_v12 = vpop.f32.mrb[13].mxu1 }
 0x77c   :  { %v917_v13 = vpop.f32.mrb[14].mxu1 }
 0x77d   :  { %v920_v14 = vmax.f32 %v915_v11, 0.0  ;;  %v1477_v15 = vpop.f32.mrb[15].mxu1 }
 0x77f   :  { %v921_v16 = vpack.c.bf16 %v920_v14, %v920_v14 }
 0x781   :  { %1495 = vmatmul.mubr.bf16.vlgmr.msra.gmra.mrb[16].mxu0 %v921_v16 }
 0x854   :  { %v1026_v20 = vpop.f32.mrb[16].mxu0 }
 0x855   :  { %v1027_v21 = vadd.f32 %v1228_v19, %v1026_v20  ;;  %v1496_v22 = vpop.f32.mrb[17].mxu0 }
 0x856   :  { %v1029_v23 = vpop.f32.mrb[18].mxu0 }
 0x857   :  { %v1032_v24 = vmax.f32 %v1027_v21, 0.0  ;;  %v1497_v25 = vpop.f32.mrb[19].mxu0 }
 0x859   :  { %v1033_v26 = vpack.c.bf16 %v1032_v24, %v1032_v24 }
 0x85b   :  { %1515 = vmatmul.mubr.bf16.vlgmr.msra.gmra.mrb[16].mxu1 %v1033_v26 }
 0x92e   :  { %v1138_v28 = vpop.f32.mrb[16].mxu1 }
 0x92f   :  { %v1139_v29 = vadd.f32 %v1237_v27, %v1138_v28  ;;  %v1516_v30 = vpop.f32.mrb[17].mxu1 }
 0x930   :  { %v1141_v31 = vpop.f32.mrb[18].mxu1 }
 0x931   :  { %1144 = vst.msk [vmem:[#allocation8] sm:$0xff] %vm67_vm1, %v1139_v29  ;;  %v1517_v0 = vpop.f32.mrb[19].mxu1 }
 0x932   :  { %1680 = shalt.err (!%p1677_p0)
}
 0x933   :  { %s1681_s15 = scalar_lea.hbm %s1896_s5, 128 }
 0x934   :  { %p1682_p1 = scmp.ne.s32.totalorder %s1896_s5, %s1681_s15  ;;  %p1685_p2 = scmp.lt.u32.totalorder %s1681_s15, %s1896_s5 }
 0x936   :  { %p1687_p3 = pnand %p1685_p2, %p1682_p1 }
 0x938   :  { %1690 = shalt.err (!%p1687_p3)
}
 0x939   :  { %1154 = dma.vmem_to_hbm [thread:$0]  %s1152_s2, 128, %s1896_s5, [#allocation4]  }
 0x93a   :  { %1695 = dma.done.wait [#allocation4], 128  }
 0x93b   :  { %1696 = vsyncadd [#allocation4], 4294967168 }
 0x93c   :  { %1158 = vsyncpa [#allocation3], 1 }
 0x93d   :  { %1159 = vsyncpa [#allocation6], 1 }
 0x93e   :  { %1160 = vsyncpa [#allocation4], 1 }

</bundles_post_ra>
